<compile_context>
chip_gen: v6e
topology: v6e:2x2x1
jax: 0.10.0
libtpu: 0.0.40
codegen_flags: <defaults>
</compile_context>

<pallas_src>
import jax
import jax.numpy as jnp
from jax.experimental import pallas as pl
from jax.experimental.pallas import tpu as pltpu

_TM_MAX = 1024  # row-tile upper bound (multiple of 8); sweepable 512-2048.

RELU_STAGE = (True, True, False)                 # conv1, conv2, conv3(+bn3 only)  /  fc1, fc2, fc3
RELU_FUSED = (True, True, True, True, False)     # fully fused (N == 1) path with conv3∘fc1 composed


def _round_up(x, m):
    return ((x + m - 1) // m) * m


def _cdiv(a, b):
    return -(-a // b)


_BF16_EPILOGUE = None


def _bf16_epilogue_ok():
    """bf16 bias/ReLU epilogue only where the VALU supports packed bf16 (v6e/v7x)."""
    global _BF16_EPILOGUE
    if _BF16_EPILOGUE is None:
        try:
            kind = jax.devices()[0].device_kind.lower()
            _BF16_EPILOGUE = ("v6" in kind) or ("v7" in kind)
        except Exception:
            _BF16_EPILOGUE = False
    return _BF16_EPILOGUE


def _choose_tile(M):
    """Balanced tiling: minimize padding, and keep >=2 grid steps for megacore."""
    n_tiles = _cdiv(M, _TM_MAX)
    if M >= 16:
        n_tiles = max(n_tiles, 2)   # v7x: 2 TCs — never leave one idle for big M
    tm = _round_up(_cdiv(M, n_tiles), 8)
    Mp = n_tiles * tm
    return tm, Mp, n_tiles


def _make_mlp_kernel(relu_flags, bf16_epilogue):
    """Kernel factory: L fused layers of (bf16 matmul -> bias add -> ReLU)."""
    n_layers = len(relu_flags)

    def kernel(x_ref, *refs):
        o_ref = refs[-1]
        h = x_ref[...]                         # bf16 activations (pre-cast by wrapper)
        for li, relu in enumerate(relu_flags):
            w = refs[2 * li][...]              # (Cin, Cout) bf16, BN scale pre-folded
            t = refs[2 * li + 1][...]          # (1, Cout)   f32  bias / folded shift
            acc = jnp.dot(h, w, preferred_element_type=jnp.float32)   # MXU, f32 acc
            last = (li + 1 == n_layers)
            if last:
                # Final layer: bias-add in f32 for accuracy, single cast to output.
                h = acc + t
                if relu:
                    h = jnp.maximum(h, 0.0)
            elif bf16_epilogue:
                # v6e/v7x: one downcast, then packed bf16 add/max (half the vreg passes).
                h = acc.astype(jnp.bfloat16) + t.astype(jnp.bfloat16)
                if relu:
                    h = jnp.maximum(h, 0)
            else:
                # v5e path: f32 VALU epilogue, downcast once for the next matmul.
                h = acc + t
                if relu:
                    h = jnp.maximum(h, 0.0)
                h = h.astype(jnp.bfloat16)
        o_ref[...] = h.astype(o_ref.dtype)

    return kernel


def _mlp(x, layers, relu_flags, out_dtype=jnp.bfloat16):
    """x: (M, Cin) bf16; layers: list of (w bf16 (Cin,Cout), t f32 (1,Cout))."""
    x = x.astype(jnp.bfloat16)
    M, Cin = x.shape
    Cout = layers[-1][0].shape[1]

    tm, Mp, n_tiles = _choose_tile(M)
    if Mp != M:
        x = jnp.pad(x, ((0, Mp - M), (0, 0)))

    in_specs = [pl.BlockSpec((tm, Cin), lambda i: (i, 0))]
    args = [x]
    for (w, t) in layers:
        # Grid-invariant blocks (constant index_map): fetched once, reused every step.
        in_specs.append(pl.BlockSpec(w.shape, lambda i: (0, 0)))
        in_specs.append(pl.BlockSpec(t.shape, lambda i: (0, 0)))
        args.extend((w, t))

    flops = 2 * Mp * sum(int(w.shape[0]) * int(w.shape[1]) for w, _ in layers)
    param_bytes = sum(int(a.size) * a.dtype.itemsize for a in args[1:])  # read once
    bytes_accessed = (int(x.size) * x.dtype.itemsize
                      + param_bytes
                      + Mp * Cout * jnp.dtype(out_dtype).itemsize)

    out = pl.pallas_call(
        _make_mlp_kernel(relu_flags, _bf16_epilogue_ok()),
        out_shape=jax.ShapeDtypeStruct((Mp, Cout), out_dtype),
        grid=(n_tiles,),
        in_specs=in_specs,
        out_specs=pl.BlockSpec((tm, Cout), lambda i: (i, 0)),
        compiler_params=pltpu.CompilerParams(
            dimension_semantics=("parallel",),
            vmem_limit_bytes=32 * 1024 * 1024),
        cost_estimate=pl.CostEstimate(
            flops=flops, transcendentals=0, bytes_accessed=bytes_accessed),
    )(*args)
    return out if Mp == M else out[:M]


def init_params(key, cin=6, eps=1e-5):
    """Deterministic synthetic parameters; BN (eval) folded into the weights (f32
    algebra, bf16 cast last).  Also builds the composed conv3∘fc1 layer used by
    the fully-fused (N == 1) path."""
    keys = iter(jax.random.split(key, 32))

    def lin(ci, co):
        w = jax.random.normal(next(keys), (ci, co), jnp.float32) / jnp.sqrt(float(ci))
        b = 0.1 * jax.random.normal(next(keys), (co,), jnp.float32)
        return w, b

    def bn(c):
        gamma = 1.0 + 0.1 * jax.random.normal(next(keys), (c,), jnp.float32)
        beta = 0.1 * jax.random.normal(next(keys), (c,), jnp.float32)
        mean = 0.1 * jax.random.normal(next(keys), (c,), jnp.float32)
        var = 1.0 + jax.random.uniform(next(keys), (c,), jnp.float32)
        return gamma, beta, mean, var

    def fold(w, b, bn_params):
        # y = ((x @ W + b) - mean) * s + beta  ==  x @ (W*s) + ((b - mean)*s + beta)
        gamma, beta, mean, var = bn_params
        s = gamma / jnp.sqrt(var + eps)
        w_f = w * s[None, :]                       # scale folded into weights (f32)
        t = ((b - mean) * s + beta).reshape(1, -1)  # shift kept as bias (f32)
        return w_f, t

    def cast(w, t):
        return w.astype(jnp.bfloat16), t

    # Pad input channels up to a sublane multiple (zero rows -> exact result).
    cin_pad = max(8, _round_up(cin, 8))
    w1, b1 = lin(cin, 64)
    w1 = jnp.pad(w1, ((0, cin_pad - cin), (0, 0)))

    w1f, t1 = fold(w1, b1, bn(64))            # conv1 + bn1
    w2f, t2 = fold(*lin(64, 128), bn(128))    # conv2 + bn2
    w3f, t3 = fold(*lin(128, 512), bn(512))   # conv3 + bn3 (no relu after)
    w4f, t4 = fold(*lin(512, 128), bn(128))   # fc1   + bn4
    w5f, t5 = fold(*lin(128, 64), bn(64))     # fc2   + bn5 (dropout = identity in eval)

    # fc3: lane-dense pad of the 2-wide output to 128 (zero weight cols / biases);
    # the wrapper slices [:, :2].
    w6, b6 = lin(64, 2)
    w6 = jnp.pad(w6, ((0, 0), (0, 126)))
    t6 = jnp.pad(b6, (0, 126)).reshape(1, 128)

    # Composed conv3∘fc1 for the fused path (no ReLU between them):
    #   (h @ W3' + t3) @ W4' + t4  ==  h @ (W3' @ W4') + (t3 @ W4' + t4)
    wc = w3f @ w4f                 # (128, 128) f32
    tc = t3 @ w4f + t4             # (1, 128)   f32

    stage1 = [cast(w1f, t1), cast(w2f, t2), cast(w3f, t3)]
    stage2 = [cast(w4f, t4), cast(w5f, t5), cast(w6, t6)]
    fused = [cast(w1f, t1), cast(w2f, t2), cast(wc, tc), cast(w5f, t5), cast(w6, t6)]

    return {"stage1": stage1, "stage2": stage2, "fused": fused,
            "cin": cin, "cin_pad": cin_pad}


def rvnet_forward(x, params):
    """x: (B, N, Cin) float32 — the input BEFORE the module's x.transpose(2, 1)."""
    B, N, Cin = x.shape
    assert Cin == params["cin"]
    M = B * N

    x2 = x.reshape(M, Cin)
    if params["cin_pad"] > Cin:
        x2 = jnp.pad(x2, ((0, 0), (0, params["cin_pad"] - Cin)))
    x2 = x2.astype(jnp.bfloat16)   # halve input DMA; kernel consumes bf16 directly

    if N == 1:
        # view(-1, 512) is a row identity when N == 1 -> all six layers (with
        # conv3∘fc1 composed into one 128x128 matmul) run in one kernel; the
        # (M, 512) intermediate never exists.
        out = _mlp(x2, params["fused"], RELU_FUSED, out_dtype=jnp.bfloat16)
    else:
        # Stage 1: pointwise convs + folded BN -> (M, 512), stored bf16.
        h = _mlp(x2, params["stage1"], RELU_STAGE, out_dtype=jnp.bfloat16)
        # Reproduce torch's x.view(-1, 512) on the (B, 512, N)-layout tensor exactly.
        # (Fusing this permutation into the stage-1 epilogue is a further win
        #  left on the table; kept as XLA glue with a bf16 intermediate.)
        h = h.reshape(B, N, 512).transpose(0, 2, 1).reshape(-1, 512)
        # Stage 2: fc1/bn4/relu -> fc2/bn5/relu -> fc3 (lane-padded to 128).
        out = _mlp(h, params["stage2"], RELU_STAGE, out_dtype=jnp.bfloat16)

    # fc3 output is lane-padded to 128 and stored bf16; keep the 2 real logits.
    return out[:, :2].astype(jnp.float32).reshape(-1, 1, 2)


if __name__ == "__main__":
    key = jax.random.PRNGKey(0)
    kx, kp = jax.random.split(key)

    # RVDatasetType.GLOBAL -> 6 input features; one point per sample (N = 1).
    B, N, Cin = 8, 1, 6
    x = jax.random.normal(kx, (B, N, Cin), jnp.float32)

    params = init_params(kp, cin=Cin)
    out = jax.block_until_ready(rvnet_forward(x, params))
    assert out.shape == (B * N, 1, 2) and out.dtype == jnp.float32

    # Also exercise the general (N > 1) two-stage path with the exact
    # torch-view reproduction.
    x_multi = jax.random.normal(kx, (4, 4, Cin), jnp.float32)
    out_multi = jax.block_until_ready(rvnet_forward(x_multi, params))
    assert out_multi.shape == (16, 1, 2) and out_multi.dtype == jnp.float32

    print("KERNEL_OK")
</pallas_src>

<mosaic_0001>
module attributes {stable_mosaic.version = 11 : i64} {
  func.func @kernel(%arg0: i32, %arg1: memref<8x8xbf16, #tpu.memory_space<vmem>>, %arg2: memref<8x64xbf16, #tpu.memory_space<vmem>>, %arg3: memref<1x64xf32, #tpu.memory_space<vmem>>, %arg4: memref<64x128xbf16, #tpu.memory_space<vmem>>, %arg5: memref<1x128xf32, #tpu.memory_space<vmem>>, %arg6: memref<128x128xbf16, #tpu.memory_space<vmem>>, %arg7: memref<1x128xf32, #tpu.memory_space<vmem>>, %arg8: memref<128x64xbf16, #tpu.memory_space<vmem>>, %arg9: memref<1x64xf32, #tpu.memory_space<vmem>>, %arg10: memref<64x128xbf16, #tpu.memory_space<vmem>>, %arg11: memref<1x128xf32, #tpu.memory_space<vmem>>, %arg12: memref<8x128xbf16, #tpu.memory_space<vmem>>) attributes {dimension_semantics = [#tpu.dimension_semantics<parallel>], iteration_bounds = array<i64: 1>, scalar_prefetch = 0 : i64, scratch_operands = 0 : i64, tpu.core_type = #tpu.core_type<tc>, window_params = [{transform_indices = @transform_0, window_bounds = array<i64: 8, 8>}, {pipeline_mode = #tpu.pipeline_mode<synchronous>, transform_indices = @transform_1, window_bounds = array<i64: 8, 64>}, {pipeline_mode = #tpu.pipeline_mode<synchronous>, transform_indices = @transform_2, window_bounds = array<i64: 1, 64>}, {pipeline_mode = #tpu.pipeline_mode<synchronous>, transform_indices = @transform_3, window_bounds = array<i64: 64, 128>}, {pipeline_mode = #tpu.pipeline_mode<synchronous>, transform_indices = @transform_4, window_bounds = array<i64: 1, 128>}, {pipeline_mode = #tpu.pipeline_mode<synchronous>, transform_indices = @transform_5, window_bounds = array<i64: 128, 128>}, {pipeline_mode = #tpu.pipeline_mode<synchronous>, transform_indices = @transform_6, window_bounds = array<i64: 1, 128>}, {pipeline_mode = #tpu.pipeline_mode<synchronous>, transform_indices = @transform_7, window_bounds = array<i64: 128, 64>}, {pipeline_mode = #tpu.pipeline_mode<synchronous>, transform_indices = @transform_8, window_bounds = array<i64: 1, 64>}, {pipeline_mode = #tpu.pipeline_mode<synchronous>, transform_indices = @transform_9, window_bounds = array<i64: 64, 128>}, {pipeline_mode = #tpu.pipeline_mode<synchronous>, transform_indices = @transform_10, window_bounds = array<i64: 1, 128>}, {transform_indices = @transform_11, window_bounds = array<i64: 8, 128>}]} {
    %c0 = arith.constant 0 : index
    %c0_0 = arith.constant 0 : index
    %0 = vector.load %arg1[%c0, %c0_0] : memref<8x8xbf16, #tpu.memory_space<vmem>>, vector<8x8xbf16>
    %c0_1 = arith.constant 0 : index
    %c0_2 = arith.constant 0 : index
    %1 = vector.load %arg2[%c0_1, %c0_2] : memref<8x64xbf16, #tpu.memory_space<vmem>>, vector<8x64xbf16>
    %c0_3 = arith.constant 0 : index
    %c0_4 = arith.constant 0 : index
    %2 = vector.load %arg3[%c0_3, %c0_4] : memref<1x64xf32, #tpu.memory_space<vmem>>, vector<1x64xf32>
    %cst = arith.constant dense<0.000000e+00> : vector<8x64xf32>
    %3 = tpu.matmul %0, %1, %cst {dimension_numbers = #tpu.dot_dimension_numbers<[1], [0], [0], [1], [0, 0, 1, 1], [], []>} : vector<8x8xbf16>, vector<8x64xbf16>, vector<8x64xf32> -> vector<8x64xf32>
    %4 = vector.broadcast %2 : vector<1x64xf32> to vector<8x64xf32>
    %5 = arith.addf %3, %4 : vector<8x64xf32>
    %cst_5 = arith.constant 0.000000e+00 : f32
    %6 = vector.broadcast %cst_5 : f32 to vector<8x64xf32>
    %7 = arith.maximumf %5, %6 : vector<8x64xf32>
    %8 = arith.truncf %7 : vector<8x64xf32> to vector<8x64xbf16>
    %c0_6 = arith.constant 0 : index
    %c0_7 = arith.constant 0 : index
    %9 = vector.load %arg4[%c0_6, %c0_7] : memref<64x128xbf16, #tpu.memory_space<vmem>>, vector<64x128xbf16>
    %c0_8 = arith.constant 0 : index
    %c0_9 = arith.constant 0 : index
    %10 = vector.load %arg5[%c0_8, %c0_9] : memref<1x128xf32, #tpu.memory_space<vmem>>, vector<1x128xf32>
    %cst_10 = arith.constant dense<0.000000e+00> : vector<8x128xf32>
    %11 = tpu.matmul %8, %9, %cst_10 {dimension_numbers = #tpu.dot_dimension_numbers<[1], [0], [0], [1], [0, 0, 1, 1], [], []>} : vector<8x64xbf16>, vector<64x128xbf16>, vector<8x128xf32> -> vector<8x128xf32>
    %12 = vector.broadcast %10 : vector<1x128xf32> to vector<8x128xf32>
    %13 = arith.addf %11, %12 : vector<8x128xf32>
    %cst_11 = arith.constant 0.000000e+00 : f32
    %14 = vector.broadcast %cst_11 : f32 to vector<8x128xf32>
    %15 = arith.maximumf %13, %14 : vector<8x128xf32>
    %16 = arith.truncf %15 : vector<8x128xf32> to vector<8x128xbf16>
    %c0_12 = arith.constant 0 : index
    %c0_13 = arith.constant 0 : index
    %17 = vector.load %arg6[%c0_12, %c0_13] : memref<128x128xbf16, #tpu.memory_space<vmem>>, vector<128x128xbf16>
    %c0_14 = arith.constant 0 : index
    %c0_15 = arith.constant 0 : index
    %18 = vector.load %arg7[%c0_14, %c0_15] : memref<1x128xf32, #tpu.memory_space<vmem>>, vector<1x128xf32>
    %cst_16 = arith.constant dense<0.000000e+00> : vector<8x128xf32>
    %19 = tpu.matmul %16, %17, %cst_16 {dimension_numbers = #tpu.dot_dimension_numbers<[1], [0], [0], [1], [0, 0, 1, 1], [], []>} : vector<8x128xbf16>, vector<128x128xbf16>, vector<8x128xf32> -> vector<8x128xf32>
    %20 = vector.broadcast %18 : vector<1x128xf32> to vector<8x128xf32>
    %21 = arith.addf %19, %20 : vector<8x128xf32>
    %cst_17 = arith.constant 0.000000e+00 : f32
    %22 = vector.broadcast %cst_17 : f32 to vector<8x128xf32>
    %23 = arith.maximumf %21, %22 : vector<8x128xf32>
    %24 = arith.truncf %23 : vector<8x128xf32> to vector<8x128xbf16>
    %c0_18 = arith.constant 0 : index
    %c0_19 = arith.constant 0 : index
    %25 = vector.load %arg8[%c0_18, %c0_19] : memref<128x64xbf16, #tpu.memory_space<vmem>>, vector<128x64xbf16>
    %c0_20 = arith.constant 0 : index
    %c0_21 = arith.constant 0 : index
    %26 = vector.load %arg9[%c0_20, %c0_21] : memref<1x64xf32, #tpu.memory_space<vmem>>, vector<1x64xf32>
    %cst_22 = arith.constant dense<0.000000e+00> : vector<8x64xf32>
    %27 = tpu.matmul %24, %25, %cst_22 {dimension_numbers = #tpu.dot_dimension_numbers<[1], [0], [0], [1], [0, 0, 1, 1], [], []>} : vector<8x128xbf16>, vector<128x64xbf16>, vector<8x64xf32> -> vector<8x64xf32>
    %28 = vector.broadcast %26 : vector<1x64xf32> to vector<8x64xf32>
    %29 = arith.addf %27, %28 : vector<8x64xf32>
    %cst_23 = arith.constant 0.000000e+00 : f32
    %30 = vector.broadcast %cst_23 : f32 to vector<8x64xf32>
    %31 = arith.maximumf %29, %30 : vector<8x64xf32>
    %32 = arith.truncf %31 : vector<8x64xf32> to vector<8x64xbf16>
    %c0_24 = arith.constant 0 : index
    %c0_25 = arith.constant 0 : index
    %33 = vector.load %arg10[%c0_24, %c0_25] : memref<64x128xbf16, #tpu.memory_space<vmem>>, vector<64x128xbf16>
    %c0_26 = arith.constant 0 : index
    %c0_27 = arith.constant 0 : index
    %34 = vector.load %arg11[%c0_26, %c0_27] : memref<1x128xf32, #tpu.memory_space<vmem>>, vector<1x128xf32>
    %cst_28 = arith.constant dense<0.000000e+00> : vector<8x128xf32>
    %35 = tpu.matmul %32, %33, %cst_28 {dimension_numbers = #tpu.dot_dimension_numbers<[1], [0], [0], [1], [0, 0, 1, 1], [], []>} : vector<8x64xbf16>, vector<64x128xbf16>, vector<8x128xf32> -> vector<8x128xf32>
    %36 = vector.broadcast %34 : vector<1x128xf32> to vector<8x128xf32>
    %37 = arith.addf %35, %36 : vector<8x128xf32>
    %38 = arith.truncf %37 : vector<8x128xf32> to vector<8x128xbf16>
    %c0_29 = arith.constant 0 : index
    %c0_30 = arith.constant 0 : index
    %39 = vector.load %arg12[%c0_29, %c0_30] : memref<8x128xbf16, #tpu.memory_space<vmem>>, vector<8x128xbf16>
    tpu.vector_store %arg12[%c0_29, %c0_30], %38 {strides = array<i32>} : memref<8x128xbf16, #tpu.memory_space<vmem>>, vector<8x128xbf16>,
    return
  }
  func.func @transform_0(%arg0: i32) -> (i32, i32) {
    %c0_i32 = arith.constant 0 : i32
    %c0_i32_0 = arith.constant 0 : i32
    return %arg0, %c0_i32 : i32, i32
  }
  func.func @transform_1(%arg0: i32) -> (i32, i32) {
    %c0_i32 = arith.constant 0 : i32
    %c0_i32_0 = arith.constant 0 : i32
    %c0_i32_1 = arith.constant 0 : i32
    return %c0_i32, %c0_i32_0 : i32, i32
  }
  func.func @transform_2(%arg0: i32) -> (i32, i32) {
    %c0_i32 = arith.constant 0 : i32
    %c0_i32_0 = arith.constant 0 : i32
    %c0_i32_1 = arith.constant 0 : i32
    return %c0_i32, %c0_i32_0 : i32, i32
  }
  func.func @transform_3(%arg0: i32) -> (i32, i32) {
    %c0_i32 = arith.constant 0 : i32
    %c0_i32_0 = arith.constant 0 : i32
    %c0_i32_1 = arith.constant 0 : i32
    return %c0_i32, %c0_i32_0 : i32, i32
  }
  func.func @transform_4(%arg0: i32) -> (i32, i32) {
    %c0_i32 = arith.constant 0 : i32
    %c0_i32_0 = arith.constant 0 : i32
    %c0_i32_1 = arith.constant 0 : i32
    return %c0_i32, %c0_i32_0 : i32, i32
  }
  func.func @transform_5(%arg0: i32) -> (i32, i32) {
    %c0_i32 = arith.constant 0 : i32
    %c0_i32_0 = arith.constant 0 : i32
    %c0_i32_1 = arith.constant 0 : i32
    return %c0_i32, %c0_i32_0 : i32, i32
  }
  func.func @transform_6(%arg0: i32) -> (i32, i32) {
    %c0_i32 = arith.constant 0 : i32
    %c0_i32_0 = arith.constant 0 : i32
    %c0_i32_1 = arith.constant 0 : i32
    return %c0_i32, %c0_i32_0 : i32, i32
  }
  func.func @transform_7(%arg0: i32) -> (i32, i32) {
    %c0_i32 = arith.constant 0 : i32
    %c0_i32_0 = arith.constant 0 : i32
    %c0_i32_1 = arith.constant 0 : i32
    return %c0_i32, %c0_i32_0 : i32, i32
  }
  func.func @transform_8(%arg0: i32) -> (i32, i32) {
    %c0_i32 = arith.constant 0 : i32
    %c0_i32_0 = arith.constant 0 : i32
    %c0_i32_1 = arith.constant 0 : i32
    return %c0_i32, %c0_i32_0 : i32, i32
  }
  func.func @transform_9(%arg0: i32) -> (i32, i32) {
    %c0_i32 = arith.constant 0 : i32
    %c0_i32_0 = arith.constant 0 : i32
    %c0_i32_1 = arith.constant 0 : i32
    return %c0_i32, %c0_i32_0 : i32, i32
  }
  func.func @transform_10(%arg0: i32) -> (i32, i32) {
    %c0_i32 = arith.constant 0 : i32
    %c0_i32_0 = arith.constant 0 : i32
    %c0_i32_1 = arith.constant 0 : i32
    return %c0_i32, %c0_i32_0 : i32, i32
  }
  func.func @transform_11(%arg0: i32) -> (i32, i32) {
    %c0_i32 = arith.constant 0 : i32
    %c0_i32_0 = arith.constant 0 : i32
    return %arg0, %c0_i32 : i32, i32
  }
}

</mosaic_0001>

<bundles_post_ra>
// kernel: tpu_custom_call.1
= control target key start
LH: loop header
LB: loop body
LE: loop exit
PB: predicated region body
PF: predicated region fallthrough
CT: control target
= control target key end

     0   :  { %16 = vsyncpa [#allocation3], 0  ;;  %s956_s0 = inlined_call_operand.vmem [shape: bf16[8,8], index: 0, kind: input, shape index: {}]   ;;  %s957_s1 = inlined_call_operand.vmem [shape: bf16[8,64], index: 1, kind: input, shape index: {}]   ;;  %s958_s2 = inlined_call_operand.vmem [shape: f32[1,64], index: 2, kind: input, shape index: {}]   ;;  %s959_s3 = inlined_call_operand.vmem [shape: bf16[64,128], index: 3, kind: input, shape index: {}]   ;;  %s960_s4 = inlined_call_operand.hbm [shape: f32[1,128], index: 4, kind: input, shape index: {}]   ;;  %s961_s5 = inlined_call_operand.vmem [shape: bf16[128,128], index: 5, kind: input, shape index: {}]   ;;  %s962_s6 = inlined_call_operand.vmem [shape: f32[1,128], index: 6, kind: input, shape index: {}]   ;;  %s963_s7 = inlined_call_operand.vmem [shape: bf16[128,64], index: 7, kind: input, shape index: {}]   ;;  %s964_s8 = inlined_call_operand.vmem [shape: f32[1,64], index: 8, kind: input, shape index: {}]   ;;  %s965_s9 = inlined_call_operand.hbm [shape: bf16[64,128], index: 9, kind: input, shape index: {}]   ;;  %s966_s10 = inlined_call_operand.vmem [shape: f32[1,128], index: 10, kind: input, shape index: {}]   ;;  %s967_s11 = inlined_call_operand.hbm [shape: bf16[8,128], index: 11, kind: output, shape index: {}]  }
   0x1   :  { %17 = vsyncpa [#allocation6], 0 }
   0x2   :  { %18 = vsyncpa [#allocation4], 0  ;;  %s765_s17 = smov [#allocation2]   ;;  %s766_s19 = smov [#allocation5]  }
   0x3   :  { %s33_s18 = sshll.u32 %s765_s17, 4  ;;  %s50_s20 = sshll.u32 %s766_s19, 4  ;;  %s34_s18 = int_to_ptr.vmem [resolvable:$true] %s33_s18  ;;  %s51_s20 = int_to_ptr.vmem [resolvable:$true] %s50_s20 }
   0x4   :  { %s707_s21 = scalar_lea.vmem %s34_s18, 16  ;;  %s711_s22 = scalar_lea.vmem %s34_s18, 32 }
   0x5   :  { %p708_p0 = scmp.ne.s32.totalorder %s34_s18, %s707_s21  ;;  %p712_p1 = scmp.lt.s32.totalorder %s34_s18, %s34_s18 }
   0x6   :  { %p713_p2 = scmp.lt.s32.totalorder %s711_s22, %s707_s21 }
   0x8   :  { %p714_p3 = por %p713_p2, %p712_p1 }
   0xa   :  { %p715_p4 = pnand %p714_p3, %p708_p0 }
   0xc   :  { %718 = shalt.err (!%p715_p4)
}
   0xd   :  { %36 = dma.hbm_to_vmem [thread:$0]  %s960_s4, 16, %s34_s18, [#allocation3]  }
   0xe   :  { %s727_s25 = scalar_lea.vmem %s51_s20, 512  ;;  %p732_p6 = scmp.lt.s32.totalorder %s51_s20, %s51_s20 }
   0xf   :  { %p728_p5 = scmp.ne.s32.totalorder %s51_s20, %s727_s25  ;;  %p733_p7 = scmp.lt.s32.totalorder %s727_s25, %s727_s25 }
  0x11   :  { %p734_p8 = por %p733_p7, %p732_p6 }
  0x13   :  { %p735_p9 = pnand %p734_p8, %p728_p5 }
  0x15   :  { %738 = shalt.err (!%p735_p9)
}
  0x16   :  { %s767_s26 = smov 64   ;;  %s768_s27 = smov 4  }
  0x17   :  { %56 = dma.hbm_to_vmem [thread:$0]  %s965_s9, 512, %s51_s20, [#allocation6], %s767_s26, %s767_s26, %s768_s27  }
  0x18   :  { %759 = dma.done.wait [#allocation3], 16  }
  0x19   :  { %760 = vsyncadd [#allocation3], 4294967280 }
  0x1a   :  { %761 = dma.done.wait [#allocation6], 512  }
  0x1b   :  { %762 = vsyncadd [#allocation6], 4294966784  ;;  %v769_v0 = vmov 0.0   ;;  %vm770_vm0 = vmmov 0   ;;  %vm79_vm1 = vcmask 1043456   ;;  %v675_v3 = vld [vmem:[%s959_s3 + $0x18] sm:$0xff]  }
  0x1c   :  { %598 = vmatprep.subr.bf16.mxu0 %v769_v0  ;;  %600 = vmatprep.mubr.msk.bf16.mxu0 %vm770_vm0, %v769_v0  ;;  %v67_v1 = vld [vmem:[%s957_s1] sm:$0xf]  ;;  %vm75_vm2 = vcmask 64512   ;;  %v676_v5 = vld [vmem:[%s959_s3 + $0x10] sm:$0xff]   ;;  %v677_v6 = vld [vmem:[%s959_s3 + $0x8] sm:$0xff]   ;;  %vm164_vm3 = vcmask 523264  }
  0x1d   :  { %604 = vmatprep.subr.bf16.mxu1 %v769_v0  ;;  %612 = vmatprep.mubr.msk.bf16.mxu1 %vm770_vm0, %v769_v0  ;;  %v81_v2 = vsel %vm79_vm1, %v67_v1, 0  ;;  %v66_v4 = vld [vmem:[%s956_s0] sm:$0xf]  ;;  %v679_v8 = vld [vmem:[%s961_s5 + $0x38] sm:$0xff]   ;;  %v680_v9 = vld [vmem:[%s961_s5 + $0x30] sm:$0xff]   ;;  %s771_s4 = smov [#allocation7]  }
  0x1e   :  { %599 = vmatpush3.bf16.msra.mxu0 %v81_v2  ;;  %605 = vmatpush3.bf16.msra.mxu1 %v675_v3  ;;  %v678_v7 = vld [vmem:[%s959_s3] sm:$0xff]   ;;  %v681_v10 = vld [vmem:[%s961_s5 + $0x28] sm:$0xff]   ;;  %v683_v12 = vld [vmem:[%s961_s5 + $0x18] sm:$0xff]   ;;  %s526_s30 = sshll.u32 %s771_s4, 4  ;;  %s527_s30 = int_to_ptr.vmem [resolvable:$true] %s526_s30 }
  0x1f   :  { %616 = vmatprep.subr.bf16.mxu0 %v769_v0  ;;  %606 = vmatprep.subr.bf16.mxu1 %v769_v0  ;;  %v682_v11 = vld [vmem:[%s961_s5 + $0x20] sm:$0xff]   ;;  %v684_v13 = vld [vmem:[%s961_s5 + $0x10] sm:$0xff]   ;;  %v685_v22 = vld [vmem:[%s961_s5 + $0x8] sm:$0xff]   ;;  %p744_p11 = scmp.lt.s32.totalorder %s527_s30, %s527_s30 }
  0x20   :  { %v536_v14 = vld [vmem:[%s958_s2] ss:$0 sm:$0xff]  ;;  %v687_v24 = vld [vmem:[%s963_s7 + $0x38] sm:$0xff]   ;;  %v688_v25 = vld [vmem:[%s963_s7 + $0x30] sm:$0xff]  }
  0x21   :  { %601 = vmatmul.mubr.msk.bf16.vlgmr.msra.gmra.mxu0 %vm75_vm2, %v66_v4  ;;  %v686_v23 = vld [vmem:[%s961_s5] sm:$0xff]   ;;  %v689_v26 = vld [vmem:[%s963_s7 + $0x28] sm:$0xff]   ;;  %v691_v28 = vld [vmem:[%s963_s7 + $0x18] sm:$0xff]  }
  0x22   :  { %632 = vmatprep.mubr.msk.bf16.mxu0 %vm770_vm0, %v769_v0  ;;  %607 = vmatpush3.bf16.msra.mxu1 %v676_v5  ;;  %v690_v27 = vld [vmem:[%s963_s7 + $0x20] sm:$0xff]   ;;  %v692_v29 = vld [vmem:[%s963_s7 + $0x10] sm:$0xff]   ;;  %v693_v38 = vld [vmem:[%s963_s7 + $0x8] sm:$0xff]  }
  0x23   :  { %608 = vmatprep.subr.bf16.mxu1 %v769_v0  ;;  %617 = vmatpush3.bf16.msra.mxu0 %v679_v8  ;;  %v538_v30 = vld [vmem:[#allocation2] ss:$0 sm:$0xff]  ;;  %v696_v41 = vld [vmem:[#allocation5 + $0x10] sm:$0xff]   ;;  %v697_v50 = vld [vmem:[#allocation5 + $0x8] sm:$0xff]  }
  0x24   :  { %618 = vmatprep.subr.bf16.mxu0 %v769_v0  ;;  %v694_v39 = vld [vmem:[%s963_s7] sm:$0xff]  }
  0x25   :  { %v695_v40 = vld [vmem:[#allocation5 + $0x18] sm:$0xff]   ;;  %v698_v51 = vld [vmem:[#allocation5] sm:$0xff]  }
  0x26   :  { %609 = vmatpush3.bf16.msra.mxu1 %v677_v6  ;;  %v544_v42 = vld [vmem:[%s962_s6] ss:$0 sm:$0xff] }
  0x27   :  { %610 = vmatprep.subr.bf16.mxu1 %v769_v0  ;;  %619 = vmatpush3.bf16.msra.mxu0 %v680_v9  ;;  %v553_v52 = vld [vmem:[%s964_s8] ss:$0 sm:$0xff]  ;;  %s739_s8 = scalar_lea.vmem %s527_s30, 64 }
  0x28   :  { %620 = vmatprep.subr.bf16.mxu0 %v769_v0  ;;  %v562_v60 = vld [vmem:[%s966_s10] ss:$0 sm:$0xff]  ;;  %p740_p10 = scmp.ne.s32.totalorder %s527_s30, %s739_s8  ;;  %p745_p12 = scmp.lt.s32.totalorder %s739_s8, %s739_s8 }
  0x2a   :  { %611 = vmatpush3.bf16.msra.mxu1 %v678_v7  ;;  %p746_p13 = por %p745_p12, %p744_p11 }
  0x2b   :  { %636 = vmatprep.subr.bf16.mxu1 %v769_v0  ;;  %621 = vmatpush3.bf16.msra.mxu0 %v681_v10 }
  0x2c   :  { %622 = vmatprep.subr.bf16.mxu0 %v769_v0  ;;  %p747_p0 = pnand %p746_p13, %p740_p10 }
  0x2f   :  { %623 = vmatpush3.bf16.msra.mxu0 %v682_v11 }
  0x30   :  { %624 = vmatprep.subr.bf16.mxu0 %v769_v0 }
  0x33   :  { %625 = vmatpush3.bf16.msra.mxu0 %v683_v12 }
  0x34   :  { %626 = vmatprep.subr.bf16.mxu0 %v769_v0 }
  0x37   :  { %627 = vmatpush3.bf16.msra.mxu0 %v684_v13 }
  0x38   :  { %628 = vmatprep.subr.bf16.mxu0 %v769_v0 }
  0x3b   :  { %629 = vmatpush3.bf16.msra.mxu0 %v685_v22 }
  0x3c   :  { %630 = vmatprep.subr.bf16.mxu0 %v769_v0 }
  0x3f   :  { %631 = vmatpush3.bf16.msra.mxu0 %v686_v23 }
  0x40   :  { %656 = vmatprep.subr.bf16.mxu0 %v769_v0 }
  0xe1   :  { %v117_v15 = vpop.f32.mrf.mxu0 }
  0xe2   :  { %v118_v16 = vadd.f32 %v536_v14, %v117_v15 }
  0xe3   :  { %v602_v17 = vpop.f32.mrf.mxu0 }
  0xe4   :  { %v123_v18 = vmax.f32 %v118_v16, 0.0 }
  0xe5   :  { %v120_v19 = vpop.f32.mrf.mxu0 }
  0xe6   :  { %v124_v20 = vpack.c.bf16 %v123_v18, %v123_v18 }
  0xe7   :  { %v603_v21 = vpop.f32.mrf.mxu0 }
  0xe8   :  { %613 = vmatmul.mubr.msk.bf16.vlgmr.msra.gmra.mxu1 %vm164_vm3, %v124_v20 }
  0xe9   :  { %652 = vmatprep.mubr.msk.bf16.mxu1 %vm770_vm0, %v769_v0  ;;  %637 = vmatpush3.bf16.msra.mxu1 %v687_v24 }
  0xea   :  { %638 = vmatprep.subr.bf16.mxu1 %v769_v0 }
  0xed   :  { %639 = vmatpush3.bf16.msra.mxu1 %v688_v25 }
  0xee   :  { %640 = vmatprep.subr.bf16.mxu1 %v769_v0 }
  0xf1   :  { %641 = vmatpush3.bf16.msra.mxu1 %v689_v26 }
  0xf2   :  { %642 = vmatprep.subr.bf16.mxu1 %v769_v0 }
  0xf5   :  { %643 = vmatpush3.bf16.msra.mxu1 %v690_v27 }
  0xf6   :  { %644 = vmatprep.subr.bf16.mxu1 %v769_v0 }
  0xf9   :  { %645 = vmatpush3.bf16.msra.mxu1 %v691_v28 }
  0xfa   :  { %646 = vmatprep.subr.bf16.mxu1 %v769_v0 }
  0xfd   :  { %647 = vmatpush3.bf16.msra.mxu1 %v692_v29 }
  0xfe   :  { %648 = vmatprep.subr.bf16.mxu1 %v769_v0 }
 0x101   :  { %649 = vmatpush3.bf16.msra.mxu1 %v693_v38 }
 0x102   :  { %650 = vmatprep.subr.bf16.mxu1 %v769_v0 }
 0x105   :  { %651 = vmatpush3.bf16.msra.mxu1 %v694_v39 }
 0x1a8   :  { %v202_v31 = vpop.f32.mrf.mxu1 }
 0x1a9   :  { %v203_v32 = vadd.f32 %v538_v30, %v202_v31 }
 0x1aa   :  { %v614_v33 = vpop.f32.mrf.mxu1 }
 0x1ab   :  { %v208_v34 = vmax.f32 %v203_v32, 0.0 }
 0x1ac   :  { %v205_v35 = vpop.f32.mrf.mxu1 }
 0x1ad   :  { %v209_v36 = vpack.c.bf16 %v208_v34, %v208_v34 }
 0x1ae   :  { %v615_v37 = vpop.f32.mrf.mxu1 }
 0x1af   :  { %633 = vmatmul.mubr.bf16.vlgmr.msra.gmra.mxu0 %v209_v36 }
 0x1b0   :  { %664 = vmatprep.mubr.msk.bf16.mxu0 %vm770_vm0, %v769_v0  ;;  %657 = vmatpush3.bf16.msra.mxu0 %v695_v40 }
 0x1b1   :  { %658 = vmatprep.subr.bf16.mxu0 %v769_v0 }
 0x1b4   :  { %659 = vmatpush3.bf16.msra.mxu0 %v696_v41 }
 0x1b5   :  { %660 = vmatprep.subr.bf16.mxu0 %v769_v0 }
 0x1b8   :  { %661 = vmatpush3.bf16.msra.mxu0 %v697_v50 }
 0x1b9   :  { %662 = vmatprep.subr.bf16.mxu0 %v769_v0 }
 0x1bc   :  { %663 = vmatpush3.bf16.msra.mxu0 %v698_v51 }
 0x26f   :  { %v315_v43 = vpop.f32.mrf.mxu0 }
 0x270   :  { %v316_v44 = vadd.f32 %v544_v42, %v315_v43 }
 0x271   :  { %v634_v45 = vpop.f32.mrf.mxu0 }
 0x272   :  { %v321_v46 = vmax.f32 %v316_v44, 0.0 }
 0x273   :  { %v318_v47 = vpop.f32.mrf.mxu0 }
 0x274   :  { %v322_v48 = vpack.c.bf16 %v321_v46, %v321_v46 }
 0x275   :  { %v635_v49 = vpop.f32.mrf.mxu0 }
 0x276   :  { %653 = vmatmul.mubr.bf16.vlgmr.msra.gmra.mxu1 %v322_v48 }
 0x336   :  { %v428_v53 = vpop.f32.mrf.mxu1 }
 0x337   :  { %v429_v54 = vadd.f32 %v553_v52, %v428_v53 }
 0x338   :  { %v654_v55 = vpop.f32.mrf.mxu1 }
 0x339   :  { %v434_v56 = vmax.f32 %v429_v54, 0.0 }
 0x33a   :  { %v431_v57 = vpop.f32.mrf.mxu1 }
 0x33b   :  { %v435_v58 = vpack.c.bf16 %v434_v56, %v434_v56 }
 0x33c   :  { %v655_v59 = vpop.f32.mrf.mxu1 }
 0x33d   :  { %665 = vmatmul.mubr.msk.bf16.vlgmr.msra.gmra.mxu0 %vm164_vm3, %v435_v58 }
 0x3fd   :  { %v512_v61 = vpop.f32.mrf.mxu0 }
 0x3fe   :  { %v513_v62 = vadd.f32 %v562_v60, %v512_v61 }
 0x3ff   :  { %v666_v63 = vpop.f32.mrf.mxu0 }
 0x400   :  { %v518_v0 = vpack.c.bf16 %v513_v62, %v513_v62 }
 0x401   :  { %v515_v1 = vpop.f32.mrf.mxu0 }
 0x402   :  { %519 = vst [vmem:[#allocation7] sm:$0xf] %v518_v0 }
 0x403   :  { %v667_v2 = vpop.f32.mrf.mxu0 }
 0x404   :  { %750 = shalt.err (!%p747_p0)
}
 0x405   :  { %529 = dma.vmem_to_hbm [thread:$0]  %s527_s30, 64, %s967_s11, [#allocation4]  }
 0x406   :  { %763 = dma.done.wait [#allocation4], 64  }
 0x407   :  { %764 = vsyncadd [#allocation4], 4294967232 }
 0x408   :  { %533 = vsyncpa [#allocation3], 1 }
 0x409   :  { %534 = vsyncpa [#allocation6], 1 }
 0x40a   :  { %535 = vsyncpa [#allocation4], 1 }

</bundles_post_ra>
